<compile_context>
chip_gen: v7x
topology: tpu7x:2x2x1
jax: 0.10.0
libtpu: 0.0.40
codegen_flags: <defaults>
</compile_context>

<pallas_src>
import jax
import jax.numpy as jnp
from jax.experimental import pallas as pl
from jax.experimental.pallas import tpu as pltpu


def _round_up(x, m):
    return ((x + m - 1) // m) * m


def _vmem_caps():
    """Generation-aware (budget, scoped-limit) in bytes."""
    try:
        info = pltpu.get_tpu_info()
        cap = int(getattr(info, "vmem_capacity_bytes", 0)) or 64 * 1024 * 1024
    except Exception:
        cap = 64 * 1024 * 1024  # assume the tightest case (v7x: 64 MiB / TensorCore)
    budget = min(cap // 2, 48 * 1024 * 1024)     # ~32 MiB on v7x, ~48 MiB on v5e/v6e
    limit = min(cap, budget + 16 * 1024 * 1024)  # scoped-VMEM limit handed to Mosaic
    return budget, limit


def _pick_tiles(n, d_pad, budget):
    """Pick (TM, TK): large resident row tile, moderate streamed column tile.

    Prefers >= 2 row tiles (v7x megacore sharding of the "parallel" axis) and
    keeps double-buffered bf16 inputs + the f32 Gram tile + scratch under the
    generation-aware VMEM budget.
    """
    for tm in (1024, 512, 256, 128):
        if tm > 128 and -(-n // tm) < 2:   # ceil-div; keep >= 2 row tiles when possible
            continue
        for tk in (512, 256, 128):
            if tk > tm:
                continue
            vmem = (2 * tm * d_pad * 2      # resident row block (bf16), double-buffered
                    + 2 * tk * d_pad * 2    # streamed col block (bf16), double-buffered
                    + 2 * tm * 4            # (TM, 1) output block, double-buffered
                    + tm * 128 * 4          # lane-wide running-max scratch
                    + 2 * tm * tk * 4)      # (TM, TK) f32 Gram intermediate + headroom
            if vmem <= budget:
                return tm, tk
    return 128, 128


def _rowmax_kernel(row_ref, col_ref, out_ref, m_ref):
    """Running row-max of G = A_rows @ A_cols^T, streamed over column tiles.

    row_ref : (TM, Dp) bf16  -- anchor rows, resident across the k axis
    col_ref : (TK, Dp) bf16  -- contrast rows, streamed along the k axis
    out_ref : (TM, 1)  f32   -- per-row max_j G_ij (written once, in finalize)
    m_ref   : (TM, 128) f32  -- lane-wide running-max scratch
    """
    k = pl.program_id(1)

    @pl.when(k == 0)
    def _init():
        m_ref[...] = jnp.full(m_ref.shape, -jnp.inf, dtype=m_ref.dtype)

    # bf16 x bf16 -> f32 on the MXU; contract over D directly (no transpose).
    g = jax.lax.dot_general(
        row_ref[...], col_ref[...],
        dimension_numbers=(((1,), (1,)), ((), ())),
        preferred_element_type=jnp.float32,
    )  # (TM, TK) f32

    # Per-step work is full-vreg VPU maxima over aligned 128-lane slices; the
    # single cross-lane (XLU) reduce happens only once per row tile below.
    m = m_ref[...]
    tk = g.shape[1]
    for c in range(tk // 128):
        m = jnp.maximum(m, g[:, c * 128:(c + 1) * 128])
    m_ref[...] = m

    @pl.when(k == pl.num_programs(1) - 1)
    def _finalize():
        out_ref[...] = jnp.max(m_ref[...], axis=1, keepdims=True)


def _similarity_loss_xla(feats, temperature, base_temperature):
    """Pure-XLA path, faithful to the PyTorch forward (features_neg=None)."""
    feats = feats.astype(jnp.float32)
    bsz, n_views = feats.shape[0], feats.shape[1]
    A = jnp.transpose(feats, (1, 0, 2)).reshape(n_views * bsz, -1)
    N = A.shape[0]
    s = (A @ A.T) / temperature
    logits = s - jnp.max(s, axis=1, keepdims=True)
    mask = jnp.ones((N, N), jnp.float32) - jnp.eye(N, dtype=jnp.float32)
    mpp = jnp.sum(mask, axis=1)
    mpp = jnp.where(mpp < 1e-6, 1.0, mpp)
    mlp = jnp.sum(mask * logits, axis=1) / mpp
    return -(temperature / base_temperature) * jnp.mean(mlp)


def similarity_loss(features_pos, features_neg=None, temperature=0.07,
                    base_temperature=0.07, *, min_pallas_n=512):
    """features_pos: [bsz, n_views, ...].  contrast_mode='all', features_neg=None."""
    if features_neg is not None:
        # TODO(synk): features_neg path (WeakSupCon) not implemented.
        raise NotImplementedError("features_neg is not None is not supported")
    if features_pos.ndim < 3:
        raise ValueError("`features` needs to be [bsz, n_views, ...]")

    bsz, n_views = features_pos.shape[0], features_pos.shape[1]
    feats = features_pos.reshape(bsz, n_views, -1)
    n = bsz * n_views

    # Small-N fast path: padding + per-grid-step overhead dominate; XLA wins.
    if n < min_pallas_n:
        return _similarity_loss_xla(feats, temperature, base_temperature)

    # Loss is invariant under row permutations of the contrast features, so the
    # PyTorch cat(unbind(., 1)) HBM relayout is replaced by a plain reshape.
    a = feats.reshape(n, -1).astype(jnp.float32)
    d = a.shape[1]

    # O(N*D) f32 reductions done once in the wrapper (colsum linearity trick):
    #   sum_i rowsum_i = ||colsum(A)||^2 ,  sum_i G_ii = ||A||_F^2
    colsum = jnp.sum(a, axis=0)
    sum_rowsum = jnp.dot(colsum, colsum)
    sum_diag = jnp.sum(a * a)

    # Pad the feature (lane / contraction) dim to a multiple of 128 and the row
    # dim to the tile; zero padding changes no dot product / row max.
    d_pad = max(128, _round_up(d, 128))
    budget, vmem_limit = _vmem_caps()
    tm, tk = _pick_tiles(n, d_pad, budget)
    n_pad = _round_up(n, max(tm, tk))
    if d_pad != d or n_pad != n:
        a_pad = jnp.pad(a, ((0, n_pad - n), (0, d_pad - d)))
    else:
        a_pad = a
    # Feed the MXU bf16 (rated path on all gens); accumulation stays f32.
    a_bf16 = a_pad.astype(jnp.bfloat16)

    grid = (n_pad // tm, n_pad // tk)

    # NOTE(v5e): if DMA is exposed after the bf16 switch, the streamed column
    # spec can be given pipeline_mode=pl.Buffered(3) at the cost of one buffer.
    rowmax = pl.pallas_call(
        _rowmax_kernel,
        out_shape=jax.ShapeDtypeStruct((n_pad, 1), jnp.float32),
        grid_spec=pltpu.PrefetchScalarGridSpec(
            num_scalar_prefetch=0,
            grid=grid,
            in_specs=[
                pl.BlockSpec((tm, d_pad), lambda i, k: (i, 0)),  # resident anchor rows
                pl.BlockSpec((tk, d_pad), lambda i, k: (k, 0)),  # streamed contrast rows
            ],
            out_specs=pl.BlockSpec((tm, 1), lambda i, k: (i, 0)),
            scratch_shapes=[pltpu.VMEM((tm, 128), jnp.float32)],
        ),
        compiler_params=pltpu.CompilerParams(
            dimension_semantics=("parallel", "arbitrary"),
            vmem_limit_bytes=vmem_limit,
        ),
    )(a_bf16, a_bf16)

    # Padded rows have an all-zero Gram row -> rowmax 0 -> contribute nothing.
    sum_rowmax = jnp.sum(rowmax)

    # mask_pos_pairs is the compile-time constant (N - 1); keep the reference's
    # <1e-6 guard as a trace-time branch (only active for N == 1).
    pos_pairs = float(n - 1)
    if pos_pairs < 1e-6:
        pos_pairs = 1.0

    # sum_i sum_{j!=i} (G_ij - rowmax_i) / T
    total = (sum_rowsum - sum_diag - (n - 1.0) * sum_rowmax) / temperature
    loss = -(temperature / base_temperature) * total / (n * pos_pairs)
    return loss


def _similarity_loss_ref(features_pos, temperature=0.07, base_temperature=0.07):
    """Pure-JAX f32 reference mirroring the PyTorch forward (features_neg=None)."""
    bsz, n_views = features_pos.shape[0], features_pos.shape[1]
    feats = features_pos.reshape(bsz, n_views, -1)
    return _similarity_loss_xla(feats, temperature, base_temperature)


if __name__ == "__main__":
    key = jax.random.PRNGKey(0)
    k1, k2, k3 = jax.random.split(key, 3)

    # Case 1: small SupCon shape forced onto the Pallas path.
    # Exercises D padding 32 -> 128, row padding 39 -> 128, single-step grid.
    fp1 = jax.random.normal(k1, (13, 3, 32), dtype=jnp.float32)
    fp1 = fp1 / jnp.linalg.norm(fp1, axis=-1, keepdims=True)
    loss1 = similarity_loss(fp1, min_pallas_n=0)
    jax.block_until_ready(loss1)
    ref1 = _similarity_loss_ref(fp1)
    assert jnp.allclose(loss1, ref1, rtol=3e-2, atol=3e-2), (loss1, ref1)

    # Case 2: multi-tile grid (2 row tiles x 2 column steps) with k-axis
    # accumulation; D padding 40 -> 128, row padding 640 -> 1024.
    fp2 = jax.random.normal(k2, (320, 2, 40), dtype=jnp.float32)
    fp2 = fp2 / jnp.linalg.norm(fp2, axis=-1, keepdims=True)
    loss2 = similarity_loss(fp2, min_pallas_n=0)
    jax.block_until_ready(loss2)
    ref2 = _similarity_loss_ref(fp2)
    assert jnp.allclose(loss2, ref2, rtol=3e-2, atol=3e-2), (loss2, ref2)

    # Case 3: tiny shape takes the small-N XLA fast path (default threshold).
    fp3 = jax.random.normal(k3, (8, 2, 16), dtype=jnp.float32)
    loss3 = similarity_loss(fp3)
    jax.block_until_ready(loss3)
    ref3 = _similarity_loss_ref(fp3)
    assert jnp.allclose(loss3, ref3, rtol=1e-5, atol=1e-5), (loss3, ref3)

    print("KERNEL_OK")
</pallas_src>

<mosaic_0001>
module attributes {stable_mosaic.version = 11 : i64} {
  func.func @_rowmax_kernel(%arg0: i32, %arg1: i32, %arg2: memref<128x128xbf16, #tpu.memory_space<vmem>>, %arg3: memref<128x128xbf16, #tpu.memory_space<vmem>>, %arg4: memref<128x1xf32, #tpu.memory_space<vmem>>, %arg5: memref<128x128xf32, #tpu.memory_space<vmem>>) attributes {dimension_semantics = [#tpu.dimension_semantics<parallel>, #tpu.dimension_semantics<arbitrary>], iteration_bounds = array<i64: 1, 1>, scalar_prefetch = 0 : i64, scratch_operands = 1 : i64, tpu.core_type = #tpu.core_type<tc>, window_params = [{transform_indices = @transform_0, window_bounds = array<i64: 128, 128>}, {transform_indices = @transform_1, window_bounds = array<i64: 128, 128>}, {transform_indices = @transform_2, window_bounds = array<i64: 128, 1>}]} {
    %c0_i32 = arith.constant 0 : i32
    %0 = arith.cmpi eq, %arg1, %c0_i32 : i32
    %1 = arith.extui %0 : i1 to i32
    %c0_i32_0 = arith.constant 0 : i32
    %2 = arith.cmpi ne, %1, %c0_i32_0 : i32
    scf.if %2 {
      %cst_10 = arith.constant 0xFF800000 : f32
      %12 = vector.broadcast %cst_10 : f32 to vector<128x128xf32>
      %c0_11 = arith.constant 0 : index
      %c0_12 = arith.constant 0 : index
      %13 = vector.load %arg5[%c0_11, %c0_12] : memref<128x128xf32, #tpu.memory_space<vmem>>, vector<128x128xf32>
      tpu.vector_store %arg5[%c0_11, %c0_12], %12 {strides = array<i32>} : memref<128x128xf32, #tpu.memory_space<vmem>>, vector<128x128xf32>,
    } else {
    }
    %c0 = arith.constant 0 : index
    %c0_1 = arith.constant 0 : index
    %3 = vector.load %arg2[%c0, %c0_1] : memref<128x128xbf16, #tpu.memory_space<vmem>>, vector<128x128xbf16>
    %c0_2 = arith.constant 0 : index
    %c0_3 = arith.constant 0 : index
    %4 = vector.load %arg3[%c0_2, %c0_3] : memref<128x128xbf16, #tpu.memory_space<vmem>>, vector<128x128xbf16>
    %cst = arith.constant dense<0.000000e+00> : vector<128x128xf32>
    %5 = tpu.matmul %3, %4, %cst {dimension_numbers = #tpu.dot_dimension_numbers<[1], [1], [0], [0], [0, 0, 1, 0], [], []>} : vector<128x128xbf16>, vector<128x128xbf16>, vector<128x128xf32> -> vector<128x128xf32>
    %c0_4 = arith.constant 0 : index
    %c0_5 = arith.constant 0 : index
    %6 = vector.load %arg5[%c0_4, %c0_5] : memref<128x128xf32, #tpu.memory_space<vmem>>, vector<128x128xf32>
    %7 = arith.maximumf %6, %5 : vector<128x128xf32>
    %c0_6 = arith.constant 0 : index
    %c0_7 = arith.constant 0 : index
    %8 = vector.load %arg5[%c0_6, %c0_7] : memref<128x128xf32, #tpu.memory_space<vmem>>, vector<128x128xf32>
    tpu.vector_store %arg5[%c0_6, %c0_7], %7 {strides = array<i32>} : memref<128x128xf32, #tpu.memory_space<vmem>>, vector<128x128xf32>,
    %c0_i32_8 = arith.constant 0 : i32
    %9 = arith.cmpi eq, %arg1, %c0_i32_8 : i32
    %10 = arith.extui %9 : i1 to i32
    %c0_i32_9 = arith.constant 0 : i32
    %11 = arith.cmpi ne, %10, %c0_i32_9 : i32
    scf.if %11 {
      %c0_10 = arith.constant 0 : index
      %c0_11 = arith.constant 0 : index
      %12 = vector.load %arg5[%c0_10, %c0_11] : memref<128x128xf32, #tpu.memory_space<vmem>>, vector<128x128xf32>
      %cst_12 = arith.constant dense<0xFF800000> : vector<128xf32>
      %13 = vector.multi_reduction <maximumf>, %12, %cst_12 [1] : vector<128x128xf32> to vector<128xf32>
      %14 = vector.shape_cast %13 : vector<128xf32> to vector<128x1xf32>
      %c0_13 = arith.constant 0 : index
      %c0_14 = arith.constant 0 : index
      %15 = vector.load %arg4[%c0_13, %c0_14] : memref<128x1xf32, #tpu.memory_space<vmem>>, vector<128x1xf32>
      tpu.vector_store %arg4[%c0_13, %c0_14], %14 {strides = array<i32>} : memref<128x1xf32, #tpu.memory_space<vmem>>, vector<128x1xf32>,
    } else {
    }
    return
  }
  func.func @transform_0(%arg0: i32, %arg1: i32) -> (i32, i32) {
    %c0_i32 = arith.constant 0 : i32
    %c0_i32_0 = arith.constant 0 : i32
    return %arg0, %c0_i32 : i32, i32
  }
  func.func @transform_1(%arg0: i32, %arg1: i32) -> (i32, i32) {
    %c0_i32 = arith.constant 0 : i32
    %c0_i32_0 = arith.constant 0 : i32
    return %arg1, %c0_i32 : i32, i32
  }
  func.func @transform_2(%arg0: i32, %arg1: i32) -> (i32, i32) {
    %c0_i32 = arith.constant 0 : i32
    %c0_i32_0 = arith.constant 0 : i32
    return %arg0, %c0_i32 : i32, i32
  }
}

</mosaic_0001>

<bundles_post_ra>
// kernel: tpu_custom_call.1
= control target key start
LH: loop header
LB: loop body
LE: loop exit
PB: predicated region body
PF: predicated region fallthrough
CT: control target
= control target key end

     0   :  { %7 = vsyncpa [#allocation4], 0  ;;  %s662_s0 = inlined_call_operand.hbm [shape: bf16[128,128], index: 0, kind: input, shape index: {}]   ;;  %s663_s1 = inlined_call_operand.hbm [shape: bf16[128,128], index: 1, kind: input, shape index: {}]   ;;  %s664_s2 = inlined_call_operand.vmem [shape: f32[128,1], index: 2, kind: output, shape index: {}]  }
   0x1   :  { %8 = vsyncpa [#allocation6], 0  ;;  %s555_s9 = smov [#allocation3]   ;;  %s507_s13 = scalar_lea.hbm %s662_s0, 1024 }
   0x2   :  { %s14_s10 = sshll.u32 %s555_s9, 4  ;;  %p508_p0 = scmp.ne.s32.totalorder %s662_s0, %s507_s13  ;;  %s15_s10 = int_to_ptr.vmem [resolvable:$true] %s14_s10 }
   0x3   :  { %p511_p1 = scmp.lt.u32.totalorder %s507_s13, %s662_s0 }
   0x5   :  { %p513_p2 = pnand %p511_p1, %p508_p0 }
   0x7   :  { %516 = shalt.err (!%p513_p2)
}
   0x8   :  { %s517_s18 = scalar_lea.vmem %s15_s10, 1024  ;;  %p522_p4 = scmp.lt.s32.totalorder %s15_s10, %s15_s10 }
   0x9   :  { %p518_p3 = scmp.ne.s32.totalorder %s15_s10, %s517_s18  ;;  %p523_p5 = scmp.lt.s32.totalorder %s517_s18, %s517_s18 }
   0xb   :  { %p524_p6 = por %p523_p5, %p522_p4 }
   0xd   :  { %p525_p7 = pnand %p524_p6, %p518_p3 }
   0xf   :  { %528 = shalt.err (!%p525_p7)
}
  0x10   :  { %s556_s19 = smov 64   ;;  %s557_s20 = smov 4  }
  0x11   :  { %20 = dma.hbm_to_vmem [thread:$0]  %s662_s0, 1024, %s15_s10, [#allocation4], %s556_s19, %s556_s19, %s557_s20  }
  0x12   :  { %s558_s23 = smov [#allocation5]   ;;  %s529_s27 = scalar_lea.hbm %s663_s1, 1024 }
  0x13   :  { %s26_s24 = sshll.u32 %s558_s23, 4  ;;  %p530_p8 = scmp.ne.s32.totalorder %s663_s1, %s529_s27  ;;  %s27_s24 = int_to_ptr.vmem [resolvable:$true] %s26_s24 }
  0x14   :  { %p533_p9 = scmp.lt.u32.totalorder %s529_s27, %s663_s1 }
  0x16   :  { %p535_p10 = pnand %p533_p9, %p530_p8 }
  0x18   :  { %538 = shalt.err (!%p535_p10)
}
  0x19   :  { %s539_s4 = scalar_lea.vmem %s27_s24, 1024  ;;  %p544_p12 = scmp.lt.s32.totalorder %s27_s24, %s27_s24 }
  0x1a   :  { %p540_p11 = scmp.ne.s32.totalorder %s27_s24, %s539_s4  ;;  %p545_p13 = scmp.lt.s32.totalorder %s539_s4, %s539_s4 }
  0x1c   :  { %p546_p0 = por %p545_p13, %p544_p12 }
  0x1e   :  { %p547_p1 = pnand %p546_p0, %p540_p11 }
  0x20   :  { %550 = shalt.err (!%p547_p1)
}
  0x21   :  { %32 = dma.hbm_to_vmem [thread:$0]  %s663_s1, 1024, %s27_s24, [#allocation6], %s556_s19, %s556_s19, %s557_s20  }
  0x22   :  { %551 = dma.done.wait [#allocation4], 1024  }
  0x23   :  { %552 = vsyncadd [#allocation4], 4294966272 }
  0x24   :  { %553 = dma.done.wait [#allocation6], 1024  }
  0x25   :  { %554 = vsyncadd [#allocation6], 4294966272  ;;  %v491_v0 = vld [vmem:[#allocation5] sm:$0xff]   ;;  %v492_v1 = vld [vmem:[#allocation5 + $0x8] sm:$0xff]   ;;  %vm384_vm0 = vcmask 7168  }
  0x26   :  { %439 = vmatprep.subr.bf16.mxu0 %v491_v0  ;;  %471 = vmatprep.subr.bf16.mxu1 %v491_v0  ;;  %v493_v2 = vld [vmem:[#allocation5 + $0x10] sm:$0xff]   ;;  %v499_v3 = vld [vmem:[#allocation3] sm:$0xff]   ;;  %v494_v5 = vld [vmem:[#allocation5 + $0x18] sm:$0xff]  }
  0x27   :  { %440 = vmatpush3.bf16.xpose.msra.mxu0 %v491_v0  ;;  %479 = vmatpush3.bf16.xpose.msra.mxu1 %v491_v0  ;;  %v500_v4 = vld [vmem:[#allocation3 + $0x20] sm:$0xff]   ;;  %v496_v7 = vld [vmem:[#allocation5 + $0x28] sm:$0xff]   ;;  %v497_v8 = vld [vmem:[#allocation5 + $0x30] sm:$0xff]  }
  0x28   :  { %441 = vmatprep.subr.bf16.mxu0 %v492_v1  ;;  %472 = vmatprep.subr.bf16.mxu1 %v492_v1  ;;  %v495_v6 = vld [vmem:[#allocation5 + $0x20] sm:$0xff]   ;;  %v498_v9 = vld [vmem:[#allocation5 + $0x38] sm:$0xff]   ;;  %v501_v10 = vld [vmem:[#allocation3 + $0x8] sm:$0xff]  }
  0x29   :  { %455 = vmatprep.mubr.bf16.mxu0 %v499_v3  ;;  %463 = vmatprep.mubr.bf16.mxu1 %v500_v4  ;;  %v502_v11 = vld [vmem:[#allocation3 + $0x28] sm:$0xff]   ;;  %v503_v12 = vld [vmem:[#allocation3 + $0x10] sm:$0xff]   ;;  %v504_v14 = vld [vmem:[#allocation3 + $0x18] sm:$0xff]  }
  0x2a   :  { %v505_v13 = vld [vmem:[#allocation3 + $0x30] sm:$0xff]   ;;  %v506_v15 = vld [vmem:[#allocation3 + $0x38] sm:$0xff]  }
  0x2f   :  { %442 = vmatpush3.bf16.xpose.msra.mxu0 %v492_v1  ;;  %480 = vmatpush3.bf16.xpose.msra.mxu1 %v492_v1 }
  0x30   :  { %443 = vmatprep.subr.bf16.mxu0 %v493_v2  ;;  %473 = vmatprep.subr.bf16.mxu1 %v493_v2 }
  0x37   :  { %444 = vmatpush3.bf16.xpose.msra.mxu0 %v493_v2  ;;  %481 = vmatpush3.bf16.xpose.msra.mxu1 %v493_v2 }
  0x38   :  { %445 = vmatprep.subr.bf16.mxu0 %v494_v5  ;;  %474 = vmatprep.subr.bf16.mxu1 %v494_v5 }
  0x3f   :  { %446 = vmatpush3.bf16.xpose.msra.mxu0 %v494_v5  ;;  %482 = vmatpush3.bf16.xpose.msra.mxu1 %v494_v5 }
  0x40   :  { %447 = vmatprep.subr.bf16.mxu0 %v495_v6  ;;  %475 = vmatprep.subr.bf16.mxu1 %v495_v6 }
  0x47   :  { %448 = vmatpush3.bf16.xpose.msra.mxu0 %v495_v6  ;;  %483 = vmatpush3.bf16.xpose.msra.mxu1 %v495_v6 }
  0x48   :  { %449 = vmatprep.subr.bf16.mxu0 %v496_v7  ;;  %476 = vmatprep.subr.bf16.mxu1 %v496_v7 }
  0x4f   :  { %450 = vmatpush3.bf16.xpose.msra.mxu0 %v496_v7  ;;  %484 = vmatpush3.bf16.xpose.msra.mxu1 %v496_v7 }
  0x50   :  { %451 = vmatprep.subr.bf16.mxu0 %v497_v8  ;;  %477 = vmatprep.subr.bf16.mxu1 %v497_v8 }
  0x57   :  { %452 = vmatpush3.bf16.xpose.msra.mxu0 %v497_v8  ;;  %485 = vmatpush3.bf16.xpose.msra.mxu1 %v497_v8 }
  0x58   :  { %453 = vmatprep.subr.bf16.mxu0 %v498_v9  ;;  %478 = vmatprep.subr.bf16.mxu1 %v498_v9 }
  0x5f   :  { %454 = vmatpush3.bf16.xpose.msra.mxu0 %v498_v9  ;;  %486 = vmatpush3.bf16.xpose.msra.mxu1 %v498_v9 }
  0x66   :  { %456 = vmatmul.mubr.bf16.vlgmr.msra.gmra.mrb[0].mxu0 %v501_v10  ;;  %464 = vmatmul.mubr.bf16.vlgmr.msra.gmra.mrb[0].mxu1 %v502_v11 }
  0x67   :  { %459 = vmatprep.mubr.bf16.mxu0 %v503_v12  ;;  %467 = vmatprep.mubr.bf16.mxu1 %v505_v13 }
  0x6e   :  { %460 = vmatmul.mubr.bf16.gmra.mrb[4].mxu0 %v504_v14  ;;  %468 = vmatmul.mubr.bf16.gmra.mrb[4].mxu1 %v506_v15 }
 0x139   :  { %v457_v16 = vpop.f32.mrb[0].mxu0  ;;  %v465_v17 = vpop.f32.mrb[0].mxu1 }
 0x13a   :  { %372 = vmax.xlane.f32.xlu0 %v465_v17  ;;  %v254_v18 = vpop.f32.mrb[1].mxu1  ;;  %356 = vmax.xlane.f32.xlu1 %v457_v16  ;;  %v222_v19 = vpop.f32.mrb[1].mxu0 }
 0x13b   :  { %v458_v20 = vpop.f32.mrb[2].mxu0  ;;  %v466_v21 = vpop.f32.mrb[2].mxu1 }
 0x13c   :  { %v225_v22 = vpop.f32.mrb[3].mxu0  ;;  %v257_v23 = vpop.f32.mrb[3].mxu1 }
 0x13e   :  { %352 = vmax.xlane.f32.xlu0 %v222_v19  ;;  %358 = vmax.xlane.f32.xlu1 %v458_v20 }
 0x141   :  { %v461_v24 = vpop.f32.mrb[4].mxu0  ;;  %v469_v25 = vpop.f32.mrb[4].mxu1 }
 0x142   :  { %368 = vmax.xlane.f32.xlu0 %v254_v18  ;;  %374 = vmax.xlane.f32.xlu1 %v466_v21  ;;  %v238_v26 = vpop.f32.mrb[5].mxu0  ;;  %v270_v27 = vpop.f32.mrb[5].mxu1 }
 0x143   :  { %v462_v28 = vpop.f32.mrb[6].mxu0  ;;  %v470_v29 = vpop.f32.mrb[6].mxu1 }
 0x144   :  { %v241_v30 = vpop.f32.mrb[7].mxu0  ;;  %v273_v31 = vpop.f32.mrb[7].mxu1 }
 0x146   :  { %370 = vmax.xlane.f32.xlu1 %v257_v23  ;;  %354 = vmax.xlane.f32.xlu0 %v225_v22 }
 0x14a   :  { %364 = vmax.xlane.f32.xlu0 %v461_v24  ;;  %366 = vmax.xlane.f32.xlu1 %v462_v28 }
 0x14e   :  { %360 = vmax.xlane.f32.xlu0 %v238_v26  ;;  %362 = vmax.xlane.f32.xlu1 %v241_v30 }
 0x152   :  { %376 = vmax.xlane.f32.xlu0 %v270_v27  ;;  %378 = vmax.xlane.f32.xlu1 %v273_v31 }
 0x156   :  { %380 = vmax.xlane.f32.xlu0 %v469_v25  ;;  %382 = vmax.xlane.f32.xlu1 %v470_v29 }
 0x1c7   :  { %v373_v32 = vpop.xlane.xlu0 %372  ;;  %v357_v33 = vpop.xlane.xlu1 %356 }
 0x1c8   :  { %395 = vst.msk [vmem:[%s664_s2 + $0x50] sm:$0xff] %vm384_vm0, %v373_v32  ;;  %387 = vst.msk [vmem:[%s664_s2 + $0x10] sm:$0xff] %vm384_vm0, %v357_v33 }
 0x1cb   :  { %v353_v34 = vpop.xlane.xlu0 %352  ;;  %v359_v35 = vpop.xlane.xlu1 %358 }
 0x1cc   :  { %385 = vst.msk [vmem:[%s664_s2] sm:$0xff] %vm384_vm0, %v353_v34  ;;  %388 = vst.msk [vmem:[%s664_s2 + $0x18] sm:$0xff] %vm384_vm0, %v359_v35 }
 0x1cf   :  { %v369_v36 = vpop.xlane.xlu0 %368  ;;  %v375_v37 = vpop.xlane.xlu1 %374 }
 0x1d0   :  { %393 = vst.msk [vmem:[%s664_s2 + $0x40] sm:$0xff] %vm384_vm0, %v369_v36  ;;  %396 = vst.msk [vmem:[%s664_s2 + $0x58] sm:$0xff] %vm384_vm0, %v375_v37 }
 0x1d3   :  { %v371_v38 = vpop.xlane.xlu1 %370  ;;  %v355_v39 = vpop.xlane.xlu0 %354 }
 0x1d4   :  { %394 = vst.msk [vmem:[%s664_s2 + $0x48] sm:$0xff] %vm384_vm0, %v371_v38  ;;  %386 = vst.msk [vmem:[%s664_s2 + $0x8] sm:$0xff] %vm384_vm0, %v355_v39 }
 0x1d7   :  { %v365_v40 = vpop.xlane.xlu0 %364  ;;  %v367_v41 = vpop.xlane.xlu1 %366 }
 0x1d8   :  { %391 = vst.msk [vmem:[%s664_s2 + $0x30] sm:$0xff] %vm384_vm0, %v365_v40  ;;  %392 = vst.msk [vmem:[%s664_s2 + $0x38] sm:$0xff] %vm384_vm0, %v367_v41 }
 0x1db   :  { %v361_v42 = vpop.xlane.xlu0 %360  ;;  %v363_v43 = vpop.xlane.xlu1 %362 }
 0x1dc   :  { %389 = vst.msk [vmem:[%s664_s2 + $0x20] sm:$0xff] %vm384_vm0, %v361_v42  ;;  %390 = vst.msk [vmem:[%s664_s2 + $0x28] sm:$0xff] %vm384_vm0, %v363_v43 }
 0x1df   :  { %v377_v44 = vpop.xlane.xlu0 %376  ;;  %v379_v45 = vpop.xlane.xlu1 %378 }
 0x1e0   :  { %397 = vst.msk [vmem:[%s664_s2 + $0x60] sm:$0xff] %vm384_vm0, %v377_v44  ;;  %398 = vst.msk [vmem:[%s664_s2 + $0x68] sm:$0xff] %vm384_vm0, %v379_v45 }
 0x1e3   :  { %v381_v46 = vpop.xlane.xlu0 %380  ;;  %v383_v47 = vpop.xlane.xlu1 %382 }
 0x1e4   :  { %399 = vst.msk [vmem:[%s664_s2 + $0x70] sm:$0xff] %vm384_vm0, %v381_v46  ;;  %400 = vst.msk [vmem:[%s664_s2 + $0x78] sm:$0xff] %vm384_vm0, %v383_v47 }
 0x1e5   :  { %405 = vsyncpa [#allocation4], 1 }
 0x1e6   :  { %406 = vsyncpa [#allocation6], 1 }

</bundles_post_ra>
